<compile_context>
chip_gen: v7x
topology: tpu7x:2x2x1
jax: 0.10.0
libtpu: 0.0.40
codegen_flags: <defaults>
</compile_context>

<pallas_src>
import math

import jax
import jax.numpy as jnp
from jax.experimental import pallas as pl
from jax.experimental.pallas import tpu as pltpu

_LANE = 128


def _round_up(a: int, b: int) -> int:
    return (a + b - 1) // b * b


def _make_pe(d_model: int, max_len: int) -> jnp.ndarray:
    """Sinusoidal positional-encoding table, shape (1, max_len, d_model)."""
    position = jnp.arange(max_len, dtype=jnp.float32)[:, None]            # (max_len, 1)
    div_term = jnp.exp(
        jnp.arange(0, d_model, 2, dtype=jnp.float32)
        * (-math.log(10000.0) / d_model)
    )                                                                     # (d_model//2,)
    angles = position * div_term                                          # (max_len, d_model//2)
    pe = jnp.zeros((max_len, d_model), dtype=jnp.float32)
    pe = pe.at[:, 0::2].set(jnp.sin(angles))
    pe = pe.at[:, 1::2].set(jnp.cos(angles))
    return pe[None, :, :]                                                 # (1, max_len, d_model)


def _add_pe_kernel(x_ref, pe_ref, o_ref):
    # x_ref: (B, tC), pe_ref: (1, tC) -> broadcast add over batch, lane-dense store.
    o_ref[...] = x_ref[...] + pe_ref[...]


def positional_encoding_forward(
    x: jnp.ndarray, pe: jnp.ndarray, *, vmem_budget_bytes: int = 8 * 1024 * 1024
) -> jnp.ndarray:
    """x: (B, S, D); pe: (1, max_len, D). Returns x + pe[:, :S] (same dtype as x)."""
    B, S, D = x.shape
    assert pe.shape[0] == 1 and pe.shape[2] == D and pe.shape[1] >= S

    flat = S * D
    bytes_per_elem = jnp.dtype(x.dtype).itemsize

    # Lane-dense layout: flatten (S, D) -> (S*D,), broadcast of pe over batch is preserved.
    x2 = x.reshape(B, flat)
    pe2 = pe[:, :S, :].astype(x.dtype).reshape(1, flat)

    # Tile width: multiple of 128 lanes, sized so double-buffered x/pe/out blocks
    # stay within the VMEM budget (conservative even for v5e's 16 MiB scoped default).
    per_col_bytes = 2 * (2 * B + 1) * bytes_per_elem   # 2x double-buffer * (x + out + pe)
    tC = max(_LANE, (vmem_budget_bytes // per_col_bytes) // _LANE * _LANE)
    flat_lane = _round_up(flat, _LANE)
    tC = min(tC, flat_lane)
    P = _round_up(flat, tC)

    if P != flat:
        x2 = jnp.pad(x2, ((0, 0), (0, P - flat)))
        pe2 = jnp.pad(pe2, ((0, 0), (0, P - flat)))

    grid = (P // tC,)

    out = pl.pallas_call(
        _add_pe_kernel,
        out_shape=jax.ShapeDtypeStruct((B, P), x.dtype),
        grid_spec=pltpu.PrefetchScalarGridSpec(
            num_scalar_prefetch=0,
            grid=grid,
            in_specs=[
                # full batch x feature-tile; batch dim equals the full array dim.
                pl.BlockSpec((B, tC), lambda c: (0, c)),
                # pe tile: fetched once per feature tile, reused across the whole batch.
                pl.BlockSpec((1, tC), lambda c: (0, c)),
            ],
            out_specs=pl.BlockSpec((B, tC), lambda c: (0, c)),
        ),
        compiler_params=pltpu.CompilerParams(
            dimension_semantics=("parallel",),
        ),
        cost_estimate=pl.CostEstimate(
            flops=B * S * D,
            transcendentals=0,
            bytes_accessed=(2 * B * S * D + S * D) * bytes_per_elem,
        ),
    )(x2, pe2)

    return out[:, :flat].reshape(B, S, D)


if __name__ == "__main__":
    # Small, deterministic example consistent with the module's forward:
    # batch=2, seq=8, d_model=32, max_len=64.
    B, S, D, MAX_LEN = 2, 8, 32, 64

    key = jax.random.PRNGKey(0)
    x = jax.random.normal(key, (B, S, D), dtype=jnp.float32)
    pe = _make_pe(D, MAX_LEN)

    fwd = jax.jit(positional_encoding_forward)
    out = jax.block_until_ready(fwd(x, pe))

    # Sanity check against plain-JAX reference.
    ref = x + pe[:, :S]
    assert out.shape == (B, S, D)
    assert jnp.allclose(out, ref, atol=1e-6), "mismatch vs reference"

    print("KERNEL_OK")
</pallas_src>

<mosaic_0001>
module attributes {stable_mosaic.version = 11 : i64} {
  func.func @_add_pe_kernel(%arg0: i32, %arg1: memref<2x256xf32, #tpu.memory_space<vmem>>, %arg2: memref<1x256xf32, #tpu.memory_space<vmem>>, %arg3: memref<2x256xf32, #tpu.memory_space<vmem>>) attributes {dimension_semantics = [#tpu.dimension_semantics<parallel>], iteration_bounds = array<i64: 1>, scalar_prefetch = 0 : i64, scratch_operands = 0 : i64, tpu.core_type = #tpu.core_type<tc>, window_params = [{transform_indices = @transform_0, window_bounds = array<i64: 2, 256>}, {transform_indices = @transform_1, window_bounds = array<i64: 1, 256>}, {transform_indices = @transform_2, window_bounds = array<i64: 2, 256>}]} {
    %c0 = arith.constant 0 : index
    %c0_0 = arith.constant 0 : index
    %0 = vector.load %arg1[%c0, %c0_0] : memref<2x256xf32, #tpu.memory_space<vmem>>, vector<2x256xf32>
    %c0_1 = arith.constant 0 : index
    %c0_2 = arith.constant 0 : index
    %1 = vector.load %arg2[%c0_1, %c0_2] : memref<1x256xf32, #tpu.memory_space<vmem>>, vector<1x256xf32>
    %2 = vector.broadcast %1 : vector<1x256xf32> to vector<2x256xf32>
    %3 = arith.addf %0, %2 : vector<2x256xf32>
    %c0_3 = arith.constant 0 : index
    %c0_4 = arith.constant 0 : index
    %4 = vector.load %arg3[%c0_3, %c0_4] : memref<2x256xf32, #tpu.memory_space<vmem>>, vector<2x256xf32>
    tpu.vector_store %arg3[%c0_3, %c0_4], %3 {strides = array<i32>} : memref<2x256xf32, #tpu.memory_space<vmem>>, vector<2x256xf32>,
    return
  }
  func.func @transform_0(%arg0: i32) -> (i32, i32) {
    %c0_i32 = arith.constant 0 : i32
    %c0_i32_0 = arith.constant 0 : i32
    return %c0_i32, %arg0 : i32, i32
  }
  func.func @transform_1(%arg0: i32) -> (i32, i32) {
    %c0_i32 = arith.constant 0 : i32
    %c0_i32_0 = arith.constant 0 : i32
    return %c0_i32, %arg0 : i32, i32
  }
  func.func @transform_2(%arg0: i32) -> (i32, i32) {
    %c0_i32 = arith.constant 0 : i32
    %c0_i32_0 = arith.constant 0 : i32
    return %c0_i32, %arg0 : i32, i32
  }
}

</mosaic_0001>

<bundles_post_ra>
// kernel: positional_encoding_forward.1
= control target key start
LH: loop header
LB: loop body
LE: loop exit
PB: predicated region body
PF: predicated region fallthrough
CT: control target
= control target key end

     0   :  { %v14_v0 = vlaneseq  ;;  %v38_v1 = vmov 1983009808   ;;  %s63_s1 = inlined_call_operand.vmem [shape: f32[1,256], index: 1, kind: input, shape index: {}]   ;;  %s64_s0 = inlined_call_operand.vmem [shape: f32[2,256], index: 0, kind: input, shape index: {}]   ;;  %s65_s2 = inlined_call_operand.vmem [shape: f32[2,256], index: 2, kind: output, shape index: {}]  }
   0x1   :  { %v24_v2 = vunpack.c.l.s4 %v38_v1  ;;  %v12_v4 = vld [vmem:[%s63_s1] sm:$0x3] }
   0x2   :  { %v15_v3 = vshrl.u32 %v14_v0, 7  ;;  %v11_v12 = vld [vmem:[%s64_s0] sm:$0xf] }
   0x3   :  { %v25_v5 = vunpack.c.0.s8 %v24_v2 }
   0x4   :  { %v16_v6 = vsub.s32 0, %v15_v3  ;;  %v20_v7 = vsub.s32 1, %v15_v3 }
   0x5   :  { %v28_v10 = vsub.s32 %v25_v5, %v15_v3 }
   0x6   :  { %v17_v8 = vrot.slane %v12_v4, %v16_v6  ;;  %v21_v9 = vrot.slane %v12_v4, %v20_v7 }
   0x8   :  { %v22_v11 = vcombine.low %v17_v8, %v21_v9 }
   0xa   :  { %v29_v13 = vrot.slane %v22_v11, %v28_v10 }
   0xc   :  { %v31_v14 = vadd.f32 %v29_v13, %v11_v12 }
   0xe   :  { %32 = vst [vmem:[%s65_s2] sm:$0xf] %v31_v14 }

</bundles_post_ra>
